<compile_context>
chip_gen: v7x
topology: tpu7x:2x2x1
jax: 0.10.0
libtpu: 0.0.40
codegen_flags: <defaults>
</compile_context>

<pallas_src>
import functools

import jax
import jax.numpy as jnp
from jax.experimental import pallas as pl
from jax.experimental.pallas import tpu as pltpu


_NEG_INF = -1e30  # finite "minus infinity": keeps fully-masked rows NaN-free


def _vmem_limit_bytes():
    """Generation-dependent VMEM budget: ~75% of physical VMEM
    (v7x 64 MiB -> 48 MiB, v5e/v6e 128 MiB -> 96 MiB)."""
    cap = 64 * 1024 * 1024
    try:
        info = pltpu.get_tpu_info()
        cap = int(getattr(info, "vmem_capacity_bytes", cap) or cap)
    except Exception:
        pass
    return (cap * 3) // 4


def _sublane_multiple(dtype):
    """Dtype-aware sublane granularity: 8 for f32, 16 for bf16, 32 for int8."""
    return max(8, 32 // jnp.dtype(dtype).itemsize)


def _pick_tile(n, target, multiple):
    """Largest divisor of n that is <= target and a multiple of `multiple`;
    falls back to the full extent (always legal for BlockSpec)."""
    if n <= target:
        return n
    for cand in range(target, multiple - 1, -1):
        if n % cand == 0 and cand % multiple == 0:
            return cand
    return n


# ---------------------------------------------------------------------------
# Projection kernel:  out[b, h, l, :] = x[b, l, :] @ W[h*dh:(h+1)*dh, :]^T
# One wide NT matmul per step (N = H*d_head), f32 accumulator over the K axis,
# head-major output written at finalize with static per-head slices.
# ---------------------------------------------------------------------------
def _proj_kernel(x_ref, w_ref, o_ref, acc_ref, *, n_head, d_head):
    @pl.when(pl.program_id(2) == 0)
    def _init():
        acc_ref[...] = jnp.zeros_like(acc_ref)

    # (TL, TK) x (H*dh, TK) contracting on TK (weight transpose absorbed by the
    # MXU operand feed) -> (TL, H*dh): all heads occupy the MXU N dimension.
    acc_ref[...] += jax.lax.dot_general(
        x_ref[0], w_ref[...],
        (((1,), (1,)), ((), ())),
        preferred_element_type=jnp.float32)

    @pl.when(pl.program_id(2) == pl.num_programs(2) - 1)
    def _store():
        # Unrolled static lane-slices of the accumulator -> head-major output.
        for h in range(n_head):
            o_ref[0, h] = acc_ref[:, h * d_head:(h + 1) * d_head].astype(o_ref.dtype)


def project_heads(x, w, n_head, d_head, *, tl_target=None, tk_target=512,
                  vmem_limit=None):
    """x: (B, L, Dm); w: (n_head*d_head, Dm) (nn.Linear layout).
    Returns (B, n_head, L, d_head)."""
    B, L, Dm = x.shape
    HD = n_head * d_head
    assert w.shape == (HD, Dm)

    if vmem_limit is None:
        vmem_limit = _vmem_limit_bytes()
    if tl_target is None:
        # Bigger L tiles halve weight re-streaming; grow on 128 MiB parts.
        tl_target = 1024 if vmem_limit >= 80 * 1024 * 1024 else 512

    TL = _pick_tile(L, tl_target, _sublane_multiple(x.dtype))
    TK = _pick_tile(Dm, tk_target, 128)
    n_lt, n_kt = L // TL, Dm // TK

    # Weight in the activation dtype: bf16 activations -> bf16 MXU matmul and
    # half the weight DMA / double-buffered VMEM.
    w = w.astype(x.dtype)

    kernel = functools.partial(_proj_kernel, n_head=n_head, d_head=d_head)
    return pl.pallas_call(
        kernel,
        out_shape=jax.ShapeDtypeStruct((B, n_head, L, d_head), x.dtype),
        grid_spec=pltpu.PrefetchScalarGridSpec(
            num_scalar_prefetch=0,
            grid=(B, n_lt, n_kt),
            in_specs=[
                pl.BlockSpec((1, TL, TK), lambda b, lt, kt: (b, lt, kt)),
                pl.BlockSpec((HD, TK), lambda b, lt, kt: (0, kt)),
            ],
            out_specs=pl.BlockSpec((1, n_head, TL, d_head),
                                   lambda b, lt, kt: (b, 0, lt, 0)),
            scratch_shapes=[pltpu.VMEM((TL, HD), jnp.float32)],
        ),
        compiler_params=pltpu.CompilerParams(
            dimension_semantics=("parallel", "parallel", "arbitrary"),
            vmem_limit_bytes=vmem_limit,
        ),
    )(x, w)


# ---------------------------------------------------------------------------
# Fused attention + output projection, full-L_k path (attn probabilities are
# materialized, as the module must return them).
# ---------------------------------------------------------------------------
def _make_attn_full_kernel(sm_scale, has_bias, n_head):
    def kernel(*refs):
        idx = 0
        q_ref = refs[idx]; idx += 1          # (1, H, TQ, dk)
        k_ref = refs[idx]; idx += 1          # (1, H, Lk, dk)
        v_ref = refs[idx]; idx += 1          # (1, H, Lk, dv)
        bias_ref = None
        if has_bias:
            bias_ref = refs[idx]; idx += 1   # (1, 1|H, TQ, Lk)
        fc_ref = refs[idx]; idx += 1         # (H*dv, d_model)
        o_ref = refs[idx]; idx += 1          # (1, TQ, d_model)
        attn_ref = refs[idx]; idx += 1       # (1, H, TQ, Lk)

        q = q_ref[0]
        k = k_ref[0]
        v = v_ref[0]

        # Fold 1/temperature into q (TQ*dk multiplies instead of TQ*Lk).
        qs = q * jnp.asarray(sm_scale, dtype=q.dtype)

        # Scores (H, TQ, Lk): heads batched, K-"transpose" absorbed by the MXU.
        s = jax.lax.dot_general(
            qs, k, (((2,), (2,)), ((0,), (0,))),
            preferred_element_type=jnp.float32)
        if bias_ref is not None:
            s = s + bias_ref[0].astype(jnp.float32)   # add in f32

        m = jnp.max(s, axis=-1, keepdims=True)
        e = jnp.exp(s - m)
        denom = jnp.sum(e, axis=-1, keepdims=True)
        p = e * pl.reciprocal(denom, approx=True)     # EUP, ~free slot
        attn_ref[0] = p.astype(attn_ref.dtype)

        # attn @ V, batched over heads -> (H, TQ, dv) f32.
        pv = jax.lax.dot_general(
            p.astype(v.dtype), v, (((2,), (1,)), ((0,), (0,))),
            preferred_element_type=jnp.float32)

        # Merge heads on the lane axis and do ONE fc matmul with K = H*d_v
        # (no (H, TQ, d_model) intermediate, no cross-head VPU reduction).
        pv_cat = jnp.concatenate(
            [pv[h].astype(fc_ref.dtype) for h in range(n_head)], axis=-1)
        o = jnp.dot(pv_cat, fc_ref[...], preferred_element_type=jnp.float32)
        o_ref[0] = o.astype(o_ref.dtype)

    return kernel


# ---------------------------------------------------------------------------
# Fused attention + output projection, flash/online-softmax path
# (return_attn=False): L_k tiled on an extra grid axis, bounded VMEM.
# ---------------------------------------------------------------------------
def _make_attn_flash_kernel(sm_scale, has_bias, n_head):
    def kernel(*refs):
        idx = 0
        q_ref = refs[idx]; idx += 1          # (1, H, TQ, dk)
        k_ref = refs[idx]; idx += 1          # (1, H, TKk, dk)
        v_ref = refs[idx]; idx += 1          # (1, H, TKk, dv)
        bias_ref = None
        if has_bias:
            bias_ref = refs[idx]; idx += 1   # (1, 1|H, TQ, TKk)
        fc_ref = refs[idx]; idx += 1         # (H*dv, d_model)
        o_ref = refs[idx]; idx += 1          # (1, TQ, d_model)
        m_ref = refs[idx]; idx += 1          # (H, TQ, 1)  f32
        l_ref = refs[idx]; idx += 1          # (H, TQ, 1)  f32
        acc_ref = refs[idx]; idx += 1        # (H, TQ, dv) f32

        kt = pl.program_id(2)

        @pl.when(kt == 0)
        def _init():
            m_ref[...] = jnp.full_like(m_ref, _NEG_INF)
            l_ref[...] = jnp.zeros_like(l_ref)
            acc_ref[...] = jnp.zeros_like(acc_ref)

        q = q_ref[0]
        k = k_ref[0]
        v = v_ref[0]
        qs = q * jnp.asarray(sm_scale, dtype=q.dtype)

        s = jax.lax.dot_general(
            qs, k, (((2,), (2,)), ((0,), (0,))),
            preferred_element_type=jnp.float32)        # (H, TQ, TKk)
        if bias_ref is not None:
            s = s + bias_ref[0].astype(jnp.float32)

        m_prev = m_ref[...]
        m_new = jnp.maximum(m_prev, jnp.max(s, axis=-1, keepdims=True))
        alpha = jnp.exp(m_prev - m_new)
        e = jnp.exp(s - m_new)
        l_ref[...] = alpha * l_ref[...] + jnp.sum(e, axis=-1, keepdims=True)
        acc_ref[...] = alpha * acc_ref[...] + jax.lax.dot_general(
            e.astype(v.dtype), v, (((2,), (1,)), ((0,), (0,))),
            preferred_element_type=jnp.float32)
        m_ref[...] = m_new

        @pl.when(kt == pl.num_programs(2) - 1)
        def _finalize():
            # Deferred normalization: scale the (H, TQ, dv) accumulator instead
            # of (H, TQ, Lk) probabilities (~Lk/dv fewer VPU multiplies).
            acc = acc_ref[...] * pl.reciprocal(l_ref[...], approx=True)
            acc_cat = jnp.concatenate(
                [acc[h].astype(fc_ref.dtype) for h in range(n_head)], axis=-1)
            o = jnp.dot(acc_cat, fc_ref[...], preferred_element_type=jnp.float32)
            o_ref[0] = o.astype(o_ref.dtype)

    return kernel


def fused_attention(qh, kh, vh, bias, fc_w, *, temperature, return_attn=True,
                    tq_target=None, tk_target=None, vmem_limit=None):
    """qh/kh/vh: (B, H, L, d); bias: (B, 1|H, Lq, Lk) or None; fc_w: (d_model, H*d_v).
    Returns ((B, Lq, d_model), attn (B, H, Lq, Lk) or None)."""
    B, H, L_q, d_k = qh.shape
    L_k = kh.shape[2]
    d_v = vh.shape[3]
    d_model = fc_w.shape[0]
    assert fc_w.shape == (d_model, H * d_v)

    if vmem_limit is None:
        vmem_limit = _vmem_limit_bytes()
    big_vmem = vmem_limit >= 80 * 1024 * 1024
    if tq_target is None:
        tq_target = 512 if big_vmem else 256
    if tk_target is None:
        tk_target = 1024 if big_vmem else 512

    sub = _sublane_multiple(qh.dtype)
    has_bias = bias is not None
    sm_scale = 1.0 / float(temperature)

    # fc weight transposed to (H*d_v, d_model) (weight-only op, matches the
    # torch head-concat order) and cast to the activation dtype.
    fc_t = jnp.transpose(fc_w).astype(qh.dtype)

    if return_attn:
        # Full-L_k residency: the module must return complete (L_q, L_k) attn
        # rows, so softmax cannot be tiled over keys without a second pass.
        # Bound the q-tile so the ~3 f32 (H, TQ, L_k) score intermediates plus
        # the attn writeback stay within the VMEM budget.
        budget = max(vmem_limit // 2, 8 * 1024 * 1024)
        per_row = 4 * H * L_k * 4
        rows = max(sub, (budget // max(per_row, 1)) // sub * sub)
        TQ = _pick_tile(L_q, min(tq_target, rows), sub)
        n_qt = L_q // TQ

        in_specs = [
            pl.BlockSpec((1, H, TQ, d_k), lambda b, qt: (b, 0, qt, 0)),
            pl.BlockSpec((1, H, L_k, d_k), lambda b, qt: (b, 0, 0, 0)),
            pl.BlockSpec((1, H, L_k, d_v), lambda b, qt: (b, 0, 0, 0)),
        ]
        args = [qh, kh, vh]
        if has_bias:
            Hb = bias.shape[1]      # 1 (shared) or H (per-head) — no H× copy
            in_specs.append(
                pl.BlockSpec((1, Hb, TQ, L_k), lambda b, qt: (b, 0, qt, 0)))
            args.append(bias)
        in_specs.append(pl.BlockSpec((H * d_v, d_model), lambda b, qt: (0, 0)))
        args.append(fc_t)

        out_shapes = (jax.ShapeDtypeStruct((B, L_q, d_model), qh.dtype),
                      jax.ShapeDtypeStruct((B, H, L_q, L_k), qh.dtype))
        out_specs = (pl.BlockSpec((1, TQ, d_model), lambda b, qt: (b, qt, 0)),
                     pl.BlockSpec((1, H, TQ, L_k), lambda b, qt: (b, 0, qt, 0)))

        kernel = _make_attn_full_kernel(sm_scale, has_bias, H)
        out, attn = pl.pallas_call(
            kernel,
            out_shape=out_shapes,
            grid_spec=pltpu.PrefetchScalarGridSpec(
                num_scalar_prefetch=0,
                grid=(B, n_qt),
                in_specs=in_specs,
                out_specs=out_specs),
            compiler_params=pltpu.CompilerParams(
                dimension_semantics=("parallel", "parallel"),
                vmem_limit_bytes=vmem_limit),
        )(*args)
        return out, attn

    # ---- flash path (no attn materialization) ----
    TQ = _pick_tile(L_q, tq_target, sub)
    n_qt = L_q // TQ
    TK = _pick_tile(L_k, tk_target, 128)   # 128: TKk is the lane dim of the bias block
    n_kt = L_k // TK

    in_specs = [
        pl.BlockSpec((1, H, TQ, d_k), lambda b, qt, kt: (b, 0, qt, 0)),
        pl.BlockSpec((1, H, TK, d_k), lambda b, qt, kt: (b, 0, kt, 0)),
        pl.BlockSpec((1, H, TK, d_v), lambda b, qt, kt: (b, 0, kt, 0)),
    ]
    args = [qh, kh, vh]
    if has_bias:
        Hb = bias.shape[1]
        in_specs.append(
            pl.BlockSpec((1, Hb, TQ, TK), lambda b, qt, kt: (b, 0, qt, kt)))
        args.append(bias)
    in_specs.append(pl.BlockSpec((H * d_v, d_model), lambda b, qt, kt: (0, 0)))
    args.append(fc_t)

    kernel = _make_attn_flash_kernel(sm_scale, has_bias, H)
    out = pl.pallas_call(
        kernel,
        out_shape=jax.ShapeDtypeStruct((B, L_q, d_model), qh.dtype),
        grid_spec=pltpu.PrefetchScalarGridSpec(
            num_scalar_prefetch=0,
            grid=(B, n_qt, n_kt),
            in_specs=in_specs,
            out_specs=pl.BlockSpec((1, TQ, d_model), lambda b, qt, kt: (b, qt, 0)),
            scratch_shapes=[pltpu.VMEM((H, TQ, 1), jnp.float32),
                            pltpu.VMEM((H, TQ, 1), jnp.float32),
                            pltpu.VMEM((H, TQ, d_v), jnp.float32)]),
        compiler_params=pltpu.CompilerParams(
            dimension_semantics=("parallel", "parallel", "arbitrary"),
            vmem_limit_bytes=vmem_limit),
    )(*args)
    return out, None


# ---------------------------------------------------------------------------
# Bias / mask folding (kept at head-dim 1 unless a per-head bias was given)
# ---------------------------------------------------------------------------
def _build_bias(attention_bias, has_attention_bias_dim_for_heads,
                attn_mask, is_attn_mask_1d, B, n_head, L_q, L_k, out_dtype):
    bias = None
    if attention_bias is not None:
        ab = jnp.asarray(attention_bias, jnp.float32)
        if not has_attention_bias_dim_for_heads:
            ab = ab[..., None, :, :]                       # (B, 1, Lq, Lk)
        bias = ab
    if attn_mask is not None:
        if is_attn_mask_1d:
            # torch semantics: 1-D mask implies L_q == L_k (self-attention).
            m = jnp.asarray(attn_mask, jnp.float32)[..., :, None]  # (B, Lq, 1)
            m2 = jnp.matmul(m, jnp.swapaxes(m, -2, -1))            # (B, Lq, Lq)
            keep = (m2 > 0)[..., None, :, :]
        else:
            keep = jnp.asarray(attn_mask, bool)[..., None, :, :]   # (B, 1, Lq, Lk)
        mb = jnp.where(keep, 0.0, _NEG_INF).astype(jnp.float32)
        bias = mb if bias is None else bias + mb
    if bias is None:
        return None
    Hb = bias.shape[1]                                     # 1 or n_head
    # Ship the bias in the activation dtype (halves DMA for bf16 activations);
    # the kernel adds it to the f32 scores.  -1e30 is representable in bf16.
    return jnp.broadcast_to(bias, (B, Hb, L_q, L_k)).astype(out_dtype)


# ---------------------------------------------------------------------------
# MultiHeadAttention forward (parameters passed explicitly)
# ---------------------------------------------------------------------------
def init_mha_params(key, d_model, n_head, d_k, d_v=None, d_k_model=None, d_v_model=None):
    d_v = d_v if d_v is not None else d_k
    d_k_model = d_k_model if d_k_model is not None else d_model
    d_v_model = d_v_model if d_v_model is not None else d_k_model
    k1, k2, k3, k4 = jax.random.split(key, 4)

    def _init(k, fan_out, fan_in):
        bound = 1.0 / (fan_in ** 0.5)
        return jax.random.uniform(
            k, (fan_out, fan_in), jnp.float32, minval=-bound, maxval=bound)

    return {
        "w_qs": _init(k1, n_head * d_k, d_model),
        "w_ks": _init(k2, n_head * d_k, d_k_model),
        "w_vs": _init(k3, n_head * d_v, d_v_model),
        "fc": _init(k4, d_model, n_head * d_v),
    }


def multi_head_attention(q, k, v, params, n_head, d_k, d_v,
                         attention_bias=None, has_attention_bias_dim_for_heads=False,
                         attn_mask=None, is_attn_mask_1d=True, return_attn=True):
    """q/k/v: (B, L, d_model)-ish.  Returns (output (B, Lq, d_model),
    attn (B, H, Lq, Lk) or None)."""
    B, L_q = q.shape[0], q.shape[-2]
    L_k = v.shape[-2]
    vmem_limit = _vmem_limit_bytes()

    # Q/K/V projections written directly in head-major (B, H, L, d) layout,
    # all heads in the matmul N dim.  q, k, v are distinct tensors, so a single
    # fused QKV matmul is not applicable in general.
    qh = project_heads(q, params["w_qs"], n_head, d_k, vmem_limit=vmem_limit)
    kh = project_heads(k, params["w_ks"], n_head, d_k, vmem_limit=vmem_limit)
    vh = project_heads(v, params["w_vs"], n_head, d_v, vmem_limit=vmem_limit)

    bias = _build_bias(attention_bias, has_attention_bias_dim_for_heads,
                       attn_mask, is_attn_mask_1d, B, n_head, L_q, L_k, q.dtype)

    return fused_attention(qh, kh, vh, bias, params["fc"],
                           temperature=d_k ** 0.5, return_attn=return_attn,
                           vmem_limit=vmem_limit)


# ---------------------------------------------------------------------------
# Pure-JAX reference (for correctness check)
# ---------------------------------------------------------------------------
def ref_mha(q, k, v, params, n_head, d_k, d_v, attention_bias=None, attn_mask_2d=None):
    B, L_q, _ = q.shape
    L_k = v.shape[1]
    qp = (q @ params["w_qs"].T).reshape(B, L_q, n_head, d_k).transpose(0, 2, 1, 3)
    kp = (k @ params["w_ks"].T).reshape(B, L_k, n_head, d_k).transpose(0, 2, 1, 3)
    vp = (v @ params["w_vs"].T).reshape(B, L_k, n_head, d_v).transpose(0, 2, 1, 3)
    s = jnp.einsum("bhqd,bhkd->bhqk", qp, kp) / (d_k ** 0.5)
    if attention_bias is not None:
        s = s + attention_bias[:, None, :, :]
    if attn_mask_2d is not None:
        s = jnp.where(attn_mask_2d[:, None, :, :], s, -jnp.inf)
    attn = jax.nn.softmax(s, axis=-1)
    o = jnp.einsum("bhqk,bhkd->bhqd", attn, vp)
    o = o.transpose(0, 2, 1, 3).reshape(B, L_q, n_head * d_v)
    return o @ params["fc"].T, attn


if __name__ == "__main__":
    key = jax.random.PRNGKey(0)
    kq, kk, kv, kb, km, kp = jax.random.split(key, 6)

    B, L, d_model, n_head, d_k = 2, 8, 32, 4, 16
    d_v = d_k

    q_in = jax.random.normal(kq, (B, L, d_model), jnp.float32)
    k_in = jax.random.normal(kk, (B, L, d_model), jnp.float32)
    v_in = jax.random.normal(kv, (B, L, d_model), jnp.float32)
    attn_bias = 0.1 * jax.random.normal(kb, (B, L, L), jnp.float32)
    # 2-D boolean mask; every query row keeps at least its diagonal key.
    mask2d = jnp.logical_or(jax.random.uniform(km, (B, L, L)) > 0.3,
                            jnp.eye(L, dtype=bool)[None])

    params = init_mha_params(kp, d_model, n_head, d_k)

    # Path 1: attention_bias + 2-D attn_mask, full path (attn returned).
    out, attn = multi_head_attention(
        q_in, k_in, v_in, params, n_head, d_k, d_v,
        attention_bias=attn_bias, has_attention_bias_dim_for_heads=False,
        attn_mask=mask2d, is_attn_mask_1d=False)
    jax.block_until_ready((out, attn))

    out_ref, attn_ref = ref_mha(q_in, k_in, v_in, params, n_head, d_k, d_v,
                                attention_bias=attn_bias, attn_mask_2d=mask2d)
    assert out.shape == (B, L, d_model) and attn.shape == (B, n_head, L, L)
    assert jnp.allclose(out, out_ref, rtol=2e-3, atol=2e-3)
    assert jnp.allclose(attn, attn_ref, rtol=2e-3, atol=2e-3)

    # Path 2: no bias, no mask, full path.
    out2, attn2 = multi_head_attention(q_in, k_in, v_in, params, n_head, d_k, d_v)
    jax.block_until_ready((out2, attn2))
    out2_ref, attn2_ref = ref_mha(q_in, k_in, v_in, params, n_head, d_k, d_v)
    assert jnp.allclose(out2, out2_ref, rtol=2e-3, atol=2e-3)
    assert jnp.allclose(attn2, attn2_ref, rtol=2e-3, atol=2e-3)

    # Path 3: flash / online-softmax path (return_attn=False) with bias + mask.
    out3, attn3 = multi_head_attention(
        q_in, k_in, v_in, params, n_head, d_k, d_v,
        attention_bias=attn_bias, has_attention_bias_dim_for_heads=False,
        attn_mask=mask2d, is_attn_mask_1d=False, return_attn=False)
    jax.block_until_ready(out3)
    assert attn3 is None
    assert jnp.allclose(out3, out_ref, rtol=2e-3, atol=2e-3)

    print("KERNEL_OK")
</pallas_src>

<mosaic_0001>
module attributes {stable_mosaic.version = 11 : i64} {
  func.func @_proj_kernel(%arg0: i32, %arg1: i32, %arg2: i32, %arg3: memref<1x8x32xf32, #tpu.memory_space<vmem>>, %arg4: memref<64x32xf32, #tpu.memory_space<vmem>>, %arg5: memref<1x4x8x16xf32, #tpu.memory_space<vmem>>, %arg6: memref<8x64xf32, #tpu.memory_space<vmem>>) attributes {dimension_semantics = [#tpu.dimension_semantics<parallel>, #tpu.dimension_semantics<parallel>, #tpu.dimension_semantics<arbitrary>], iteration_bounds = array<i64: 2, 1, 1>, scalar_prefetch = 0 : i64, scratch_operands = 1 : i64, tpu.core_type = #tpu.core_type<tc>, window_params = [{transform_indices = @transform_0, window_bounds = array<i64: 1, 8, 32>}, {transform_indices = @transform_1, window_bounds = array<i64: 64, 32>}, {transform_indices = @transform_2, window_bounds = array<i64: 1, 4, 8, 16>}]} {
    %c0_i32 = arith.constant 0 : i32
    %0 = arith.cmpi eq, %arg2, %c0_i32 : i32
    %1 = arith.extui %0 : i1 to i32
    %c0_i32_0 = arith.constant 0 : i32
    %2 = arith.cmpi ne, %1, %c0_i32_0 : i32
    scf.if %2 {
      %cst_11 = arith.constant 0.000000e+00 : f32
      %13 = vector.broadcast %cst_11 : f32 to vector<8x64xf32>
      %c0_12 = arith.constant 0 : index
      %c0_13 = arith.constant 0 : index
      %14 = vector.load %arg6[%c0_12, %c0_13] : memref<8x64xf32, #tpu.memory_space<vmem>>, vector<8x64xf32>
      tpu.vector_store %arg6[%c0_12, %c0_13], %13 {strides = array<i32>} : memref<8x64xf32, #tpu.memory_space<vmem>>, vector<8x64xf32>,
    } else {
    }
    %c0 = arith.constant 0 : index
    %c0_1 = arith.constant 0 : index
    %3 = vector.load %arg6[%c0, %c0_1] : memref<8x64xf32, #tpu.memory_space<vmem>>, vector<8x64xf32>
    %c0_2 = arith.constant 0 : index
    %c0_3 = arith.constant 0 : index
    %c0_4 = arith.constant 0 : index
    %4 = vector.load %arg3[%c0_2, %c0_3, %c0_4] : memref<1x8x32xf32, #tpu.memory_space<vmem>>, vector<1x8x32xf32>
    %5 = vector.shape_cast %4 : vector<1x8x32xf32> to vector<8x32xf32>
    %c0_5 = arith.constant 0 : index
    %c0_6 = arith.constant 0 : index
    %6 = vector.load %arg4[%c0_5, %c0_6] : memref<64x32xf32, #tpu.memory_space<vmem>>, vector<64x32xf32>
    %cst = arith.constant dense<0.000000e+00> : vector<8x64xf32>
    %7 = tpu.matmul %5, %6, %cst {dimension_numbers = #tpu.dot_dimension_numbers<[1], [1], [0], [0], [0, 0, 1, 0], [], []>} : vector<8x32xf32>, vector<64x32xf32>, vector<8x64xf32> -> vector<8x64xf32>
    %8 = arith.addf %3, %7 : vector<8x64xf32>
    %c0_7 = arith.constant 0 : index
    %c0_8 = arith.constant 0 : index
    %9 = vector.load %arg6[%c0_7, %c0_8] : memref<8x64xf32, #tpu.memory_space<vmem>>, vector<8x64xf32>
    tpu.vector_store %arg6[%c0_7, %c0_8], %8 {strides = array<i32>} : memref<8x64xf32, #tpu.memory_space<vmem>>, vector<8x64xf32>,
    %c0_i32_9 = arith.constant 0 : i32
    %10 = arith.cmpi eq, %arg2, %c0_i32_9 : i32
    %11 = arith.extui %10 : i1 to i32
    %c0_i32_10 = arith.constant 0 : i32
    %12 = arith.cmpi ne, %11, %c0_i32_10 : i32
    scf.if %12 {
      %c0_11 = arith.constant 0 : index
      %c0_12 = arith.constant 0 : index
      %13 = vector.load %arg6[%c0_11, %c0_12] : memref<8x64xf32, #tpu.memory_space<vmem>>, vector<8x16xf32>
      %c0_13 = arith.constant 0 : index
      %c0_14 = arith.constant 0 : index
      %c0_15 = arith.constant 0 : index
      %c0_16 = arith.constant 0 : index
      %14 = vector.load %arg5[%c0_13, %c0_14, %c0_15, %c0_16] : memref<1x4x8x16xf32, #tpu.memory_space<vmem>>, vector<1x1x8x16xf32>
      %15 = vector.shape_cast %14 : vector<1x1x8x16xf32> to vector<8x16xf32>
      %16 = vector.shape_cast %13 : vector<8x16xf32> to vector<1x1x8x16xf32>
      tpu.vector_store %arg5[%c0_13, %c0_14, %c0_15, %c0_16], %16 {strides = array<i32>} : memref<1x4x8x16xf32, #tpu.memory_space<vmem>>, vector<1x1x8x16xf32>,
      %c0_17 = arith.constant 0 : index
      %c16 = arith.constant 16 : index
      %17 = vector.load %arg6[%c0_17, %c16] : memref<8x64xf32, #tpu.memory_space<vmem>>, vector<8x16xf32>
      %c0_18 = arith.constant 0 : index
      %c1 = arith.constant 1 : index
      %c0_19 = arith.constant 0 : index
      %c0_20 = arith.constant 0 : index
      %18 = vector.load %arg5[%c0_18, %c1, %c0_19, %c0_20] : memref<1x4x8x16xf32, #tpu.memory_space<vmem>>, vector<1x1x8x16xf32>
      %19 = vector.shape_cast %18 : vector<1x1x8x16xf32> to vector<8x16xf32>
      %20 = vector.shape_cast %17 : vector<8x16xf32> to vector<1x1x8x16xf32>
      tpu.vector_store %arg5[%c0_18, %c1, %c0_19, %c0_20], %20 {strides = array<i32>} : memref<1x4x8x16xf32, #tpu.memory_space<vmem>>, vector<1x1x8x16xf32>,
      %c0_21 = arith.constant 0 : index
      %c32 = arith.constant 32 : index
      %21 = vector.load %arg6[%c0_21, %c32] : memref<8x64xf32, #tpu.memory_space<vmem>>, vector<8x16xf32>
      %c0_22 = arith.constant 0 : index
      %c2 = arith.constant 2 : index
      %c0_23 = arith.constant 0 : index
      %c0_24 = arith.constant 0 : index
      %22 = vector.load %arg5[%c0_22, %c2, %c0_23, %c0_24] : memref<1x4x8x16xf32, #tpu.memory_space<vmem>>, vector<1x1x8x16xf32>
      %23 = vector.shape_cast %22 : vector<1x1x8x16xf32> to vector<8x16xf32>
      %24 = vector.shape_cast %21 : vector<8x16xf32> to vector<1x1x8x16xf32>
      tpu.vector_store %arg5[%c0_22, %c2, %c0_23, %c0_24], %24 {strides = array<i32>} : memref<1x4x8x16xf32, #tpu.memory_space<vmem>>, vector<1x1x8x16xf32>,
      %c0_25 = arith.constant 0 : index
      %c48 = arith.constant 48 : index
      %25 = vector.load %arg6[%c0_25, %c48] : memref<8x64xf32, #tpu.memory_space<vmem>>, vector<8x16xf32>
      %c0_26 = arith.constant 0 : index
      %c3 = arith.constant 3 : index
      %c0_27 = arith.constant 0 : index
      %c0_28 = arith.constant 0 : index
      %26 = vector.load %arg5[%c0_26, %c3, %c0_27, %c0_28] : memref<1x4x8x16xf32, #tpu.memory_space<vmem>>, vector<1x1x8x16xf32>
      %27 = vector.shape_cast %26 : vector<1x1x8x16xf32> to vector<8x16xf32>
      %28 = vector.shape_cast %25 : vector<8x16xf32> to vector<1x1x8x16xf32>
      tpu.vector_store %arg5[%c0_26, %c3, %c0_27, %c0_28], %28 {strides = array<i32>} : memref<1x4x8x16xf32, #tpu.memory_space<vmem>>, vector<1x1x8x16xf32>,
    } else {
    }
    return
  }
  func.func @transform_0(%arg0: i32, %arg1: i32, %arg2: i32) -> (i32, i32, i32) {
    %c0_i32 = arith.constant 0 : i32
    return %arg0, %arg1, %arg2 : i32, i32, i32
  }
  func.func @transform_1(%arg0: i32, %arg1: i32, %arg2: i32) -> (i32, i32) {
    %c0_i32 = arith.constant 0 : i32
    %c0_i32_0 = arith.constant 0 : i32
    return %c0_i32, %arg2 : i32, i32
  }
  func.func @transform_2(%arg0: i32, %arg1: i32, %arg2: i32) -> (i32, i32, i32, i32) {
    %c0_i32 = arith.constant 0 : i32
    %c0_i32_0 = arith.constant 0 : i32
    %c0_i32_1 = arith.constant 0 : i32
    return %arg0, %c0_i32, %arg1, %c0_i32_0 : i32, i32, i32, i32
  }
}

</mosaic_0001>

<bundles_post_ra>
// kernel: tpu_custom_call.1
= control target key start
LH: loop header
LB: loop body
LE: loop exit
PB: predicated region body
PF: predicated region fallthrough
CT: control target
= control target key end

     0   :  { %7 = vsyncpa [#allocation4], 0  ;;  %s851_s0 = inlined_call_operand.vmem [shape: f32[2,8,32], index: 0, kind: input, shape index: {}]   ;;  %s852_s1 = inlined_call_operand.vmem [shape: f32[64,32], index: 1, kind: input, shape index: {}]   ;;  %s853_s2 = inlined_call_operand.hbm [shape: f32[2,4,8,16], index: 2, kind: output, shape index: {}]  }
   0x1   :  { %9 = vsyncpa [#allocation4 + $0x1], 0  ;;  %s691_s9 = smov 0   ;;  %s693_s10 = smov 0  }
   0x2   :  { %s695_s11 = smov 0   ;;  %s697_s12 = smov 0  }
   0x3   :  { %s699_s13 = smov 0   ;;  %s701_s14 = smov 0  }
   0x4 LB: > { %s454_s15 = sadd.s32 4294967295, %s665_s14   ;;  %s455_s16 = sadd.s32 4294967294, %s665_s14   ;;  %s665_s14 = sphi %s701_s14, %s15_s14   ;;  %s661_s13 = sphi %s699_s13, %s862_s13   ;;  %s657_s12 = sphi %s697_s12, %s861_s12   ;;  %s653_s11 = sphi %s695_s11, %s860_s11   ;;  %s649_s10 = sphi %s693_s10, %s859_s10   ;;  %s645_s9 = sphi %s691_s9, %s858_s9  }
   0x5   : > { %s34_s17 = sadd.s32 1, %s661_s13  ;;  %s99_s18 = sadd.s32 1, %s653_s11 }
   0x6   : > { %p36_p0 = scmp.ge.s32.totalorder %s34_s17, 2  ;;  %p109_p1 = scmp.ne.s32.totalorder %s653_s11, %s649_s10 }
   0x7   : > { %p110_p2 = scmp.eq.s32.totalorder %s454_s15, 1  ;;  %p115_p3 = scmp.ne.s32.totalorder %s649_s10, %s645_s9 }
   0x8   : > { %s864_s17 = smov (%p36_p0, %s34_s17), 0  ;;  %p116_p5 = scmp.eq.s32.totalorder %s455_s16, 1 }
   0x9   : > { %p731_p4 = por %p110_p2, %p109_p1  ;;  %s94_s20 = ssub.s32 %s661_s13, %s864_s17 }
   0xa   : > { %p459_p6 = scmp.ge.s32.totalorder %s665_s14, 1  ;;  %p97_p7 = scmp.eq.s32.totalorder %s94_s20, 0 }
   0xb   : > { %p738_p8 = por %p116_p5, %p115_p3  ;;  %p154_p9 = scmp.lt.s32.totalorder %s665_s14, 3 }
   0xc   : > { %s744_s22 = scalar_select %p97_p7, %s653_s11, %s99_s18  }
   0xd   : > { %p155_p10 = pnand %p459_p6, %p154_p9 }
   0xe   : > { %v207_v0 = vld [vmem:[%s852_s1] sm:$0xff] (!%p155_p10)  ;;  %v208_v1 = vld [vmem:[%s852_s1 + $0x8] sm:$0xff] (!%p155_p10)  ;;  %vm215_vm0 = vcmask (!%p155_p10), 261120   ;;  %vm203_vm1 = vcmask (!%p155_p10), 523264   ;;  %v667_v2 = vmov (!%p155_p10), 0.0|0.0   ;;  %v668_v5 = vmov (!%p155_p10), 0.0  }
   0xf   : > { %158 = sbr.rel (%p155_p10) target bundleno = 404 (0x194), region = 28  ;;  %508 = vmatprep.subr.bf16.mxu0 (!%p155_p10), %v667_v2  ;;  %v509_v3 = vpack.c.bf16 (!%p155_p10), %v208_v1, %v207_v0  ;;  %vm754_vm2 = vmpackc.low (!%p155_p10), %vm215_vm0, %vm215_vm0  ;;  %204 = vst.msk [vmem:[#allocation2] sm:$0xff] (!%p155_p10), %vm203_vm1, %v668_v5  ;;  %vm669_vm3 = vmmov (!%p155_p10), 0   ;;  %v209_v6 = vld [vmem:[%s852_s1 + $0x10] sm:$0xff] (!%p155_p10)  ;;  %v210_v7 = vld [vmem:[%s852_s1 + $0x18] sm:$0xff] (!%p155_p10)  ;;  %p185_p11 = scmp.lt.s32.totalorder (!%p155_p10), %s657_s12, 1 }
  0x10   : > { %505 = vmatprep.mubr.msk.f32.mxu0 (!%p155_p10), %vm669_vm3, %v668_v5  ;;  %v513_v8 = vpack.c.bf16 (!%p155_p10), %v210_v7, %v209_v6  ;;  %v211_v9 = vld [vmem:[%s852_s1 + $0x20] sm:$0xff] (!%p155_p10)  ;;  %v212_v10 = vld [vmem:[%s852_s1 + $0x28] sm:$0xff] (!%p155_p10)  ;;  %v213_v12 = vld [vmem:[%s852_s1 + $0x30] sm:$0xff] (!%p155_p10)  ;;  %s182_s26 = sand.u32 (!%p155_p10), 1, %s649_s10   ;;  %vm320_vm4 = vcmask (!%p155_p10), 130048   ;;  %s670_s28 = smov (!%p155_p10), 80  }
  0x11   : > { %511 = vmatpush3.bf16.xpose.msk.msra.mxu0 (!%p155_p10), %vm754_vm2, %v509_v3  ;;  %v517_v11 = vpack.c.bf16 (!%p155_p10), %v212_v10, %v211_v9  ;;  %v214_v13 = vld [vmem:[%s852_s1 + $0x38] sm:$0xff] (!%p155_p10)  ;;  %s460_s27 = sshll.u32 (!%p155_p10), %s182_s26, 5  ;;  %s671_s29 = smov (!%p155_p10), 112  }
  0x12   : > { %512 = vmatprep.subr.bf16.mxu0 (!%p155_p10), %v667_v2  ;;  %v521_v14 = vpack.c.bf16 (!%p155_p10), %v214_v13, %v213_v12  ;;  %s184_s30 = scalar_lea.vmem (!%p155_p10), [#allocation3], %s460_s27  ;;  %s672_s3 = smov (!%p155_p10), 96  }
  0x13   : > { %s358_s4 = sshll.u32 (!%p155_p10), %s184_s30, 4  ;;  %s479_s5 = sshll.u32 (!%p155_p10), %s657_s12, 9  ;;  %s797_s4 = int_to_ptr.vmem [resolvable:$true] %s358_s4 }
  0x14   : > { %s802_s8 = scalar_lea.hbm (!%p155_p10), %s853_s2, %s479_s5  ;;  %s587_s15 = scalar_lea.vmem (!%p155_p10), %s797_s4, 512 }
  0x15   : > { %p588_p12 = scmp.ne.s32.totalorder (!%p155_p10), %s797_s4, %s587_s15  ;;  %s673_s16 = smov (!%p155_p10), [#allocation3]  }
  0x16   : > { %s186_s18 = scalar_select %p185_p11, %s657_s12, 1  ;;  %v205_v16 = vld [vmem:[#allocation2] sm:$0xff] }
  0x17   : > { %s805_s12 = scalar_lea.sflag [#allocation4], %s182_s26  ;;  %p589_p13 = pnand %p588_p12, %p731_p4 }
  0x18   : > { %s461_s20 = sshll.u32 %s186_s18, 3  ;;  %s591_s18 = sshll.u32 %s673_s16, 4  ;;  %s592_s18 = int_to_ptr.vmem [resolvable:$false] %s591_s18 }
  0x19   : > { %515 = vmatpush3.bf16.xpose.msk.msra.mxu0 %vm754_vm2, %v513_v8  ;;  %s194_s25 = scalar_lea.vmem %s851_s0, %s461_s20  ;;  %p590_p0 = pneg %p589_p13 }
  0x1a   : > { %516 = vmatprep.subr.bf16.mxu0 %v667_v2  ;;  %v206_v15 = vld [vmem:[%s194_s25] sm:$0xff]  ;;  %s593_s20 = scalar_lea.vmem %s592_s18, 1024  ;;  %p594_p1 = scmp.lt.s32.totalorder %s797_s4, %s592_s18 }
  0x1b   : > { %p595_p2 = scmp.lt.s32.totalorder %s593_s20, %s587_s15 }
  0x1d   : > { %p596_p3 = por %p595_p2, %p594_p1 }
  0x1f   : > { %p597_p5 = pnand %p596_p3, %p590_p0 }
  0x21   : > { %519 = vmatpush3.bf16.xpose.msk.msra.mxu0 %vm754_vm2, %v517_v11 }
  0x22   : > { %520 = vmatprep.subr.bf16.mxu0 %v667_v2 }
  0x29   : > { %523 = vmatpush3.bf16.xpose.msk.msra.mxu0 %vm754_vm2, %v521_v14 }
  0x30   : > { %506 = vmatmul.mubr.msk.f32.vlgmr.msra.gmra.mrb[0].mxu0 %vm215_vm0, %v206_v15 }
 0x103   : > { %v309_v17 = vpop.f32.mrb[0].mxu0 }
 0x104   : > { %v313_v18 = vadd.f32 %v309_v17, %v205_v16  ;;  %v507_v19 = vpop.f32.mrb[1].mxu0 }
 0x106   : > { %315 = vst.msk [vmem:[#allocation2] sm:$0xff] %vm203_vm1, %v313_v18 }
 0x10d   : > { %v336_v20 = vld [vmem:[#allocation2] sm:$0xff] }
 0x10e   : > { %338 = vrot.lane.b32.xlu1 %v336_v20, %s670_s28  ;;  %324 = vrot.lane.b32.xlu0 %v336_v20, %s671_s29  ;;  %321 = vst.msk [vmem:[%s184_s30] sm:$0xff] %vm320_vm4, %v336_v20 }
 0x112   : > { %331 = vrot.lane.b32.xlu0 %v336_v20, %s672_s3 }
 0x180   : > { %v339_v21 = vpop.permute.xlu1 %338  ;;  %v325_v22 = vpop.permute.xlu0 %324 }
 0x181   : > { %473 = vst.msk [vmem:[%s184_s30 + $0x18] sm:$0xff] %vm320_vm4, %v339_v21  ;;  %471 = vst.msk [vmem:[%s184_s30 + $0x8] sm:$0xff] %vm320_vm4, %v325_v22 }
 0x184   : > { %v332_v23 = vpop.permute.xlu0 %331 }
 0x185   : > { %472 = vst.msk [vmem:[%s184_s30 + $0x10] sm:$0xff] %vm320_vm4, %v332_v23 }
 0x186   : > { %600 = shalt.err (!%p597_p5)
}
 0x187   : > { %s601_s23 = scalar_lea.hbm %s802_s8, 512  ;;  %s605_s26 = scalar_lea.hbm %s853_s2, 1024 }
 0x188   : > { %p602_p6 = scmp.ne.s32.totalorder %s802_s8, %s601_s23  ;;  %p606_p10 = scmp.lt.u32.totalorder %s802_s8, %s853_s2 }
 0x189   : > { %p607_p11 = scmp.lt.u32.totalorder %s605_s26, %s601_s23  ;;  %p609_p13 = scmp.lt.u32.totalorder %s601_s23, %s802_s8 }
 0x18a   : > { %p603_p7 = pnand %p602_p6, %p731_p4 }
 0x18b   : > { %p608_p12 = por %p607_p11, %p606_p10 }
 0x18c   : > { %p604_p9 = pneg %p603_p7 }
 0x18d   : > { %p610_p0 = por %p609_p13, %p608_p12 }
 0x18f   : > { %p611_p1 = pnand %p610_p0, %p604_p9 }
 0x191   : > { %614 = shalt.err (!%p611_p1)
}
 0x192   : > { %s674_s29 = smov 128   ;;  %s675_s30 = smov 8  }
 0x193   : > { %524 = dma.vmem_to_hbm [thread:$0]  (%p731_p4), %s797_s4, 512, %s802_s8, %s805_s12, %s674_s29, %s674_s29, %s675_s30  }
 0x194 PF: > { %p530_p2 = scmp.ge.s32.totalorder %s665_s14, 2  ;;  %s373_s3 = sand.u32 1, %s645_s9  }
 0x195   : > { %s374_s5 = scalar_lea.sflag [#allocation4], %s373_s3 }
 0x196   : > { %p527_p3 = pnand %p530_p2, %p738_p8 }
 0x198   : > { %640 = dma.done.wait (!%p527_p3), %s374_s5, 512  }
 0x199   : > { %642 = vsyncadd (!%p527_p3), %s374_s5, 4294966784  ;;  %s15_s14 = sadd.s32 1, %s665_s14   ;;  %s858_s9 = smov %s649_s10 }
 0x19a   : > { %p12_p5 = scmp.ge.s32.totalorder %s15_s14, 4   ;;  %s859_s10 = smov %s653_s11 }
 0x19b   : > { %s860_s11 = smov %s744_s22  ;;  %s861_s12 = smov %s661_s13 }
 0x19c   : > { %s862_s13 = smov %s864_s17  ;;  %14 = sbr.rel (!%p12_p5) target bundleno = 4 (0x4), region = 77 }
 0x1a3   :  { %379 = vsyncpa [#allocation4], 1 }
 0x1a4   :  { %381 = vsyncpa [#allocation4 + $0x1], 1 }

</bundles_post_ra>
